<compile_context>
chip_gen: v5e
topology: v5e:2x2
jax: 0.10.0
libtpu: 0.0.40
codegen_flags: <defaults>
</compile_context>

<pallas_src>
import functools

import jax
import jax.numpy as jnp
from jax import lax
from jax.experimental import pallas as pl
from jax.experimental.pallas import tpu as pltpu


def _round_up(x, m):
    return ((x + m - 1) // m) * m


def _value_mlp_kernel(x_ref, w1_ref, b1_ref, w2_ref, b2_ref, o_ref):
    # x:  (TB, S) input dtype     w1: (S, D) bf16     b1: (1, D) f32
    # w2: (A8, D) bf16 (sublane-padded)   b2: (A, 1) f32   o: (A, TB) f32
    x = x_ref[...].astype(jnp.bfloat16)          # VPU cast, hidden under DMA

    # fc1 + ReLU  (bf16 MXU inputs, f32 accumulation)
    h = jnp.dot(x, w1_ref[...], preferred_element_type=jnp.float32) + b1_ref[...]
    h = jnp.maximum(h, 0.0).astype(jnp.bfloat16)

    # fc2 computed directly in (out_features, batch) orientation so the store
    # is lane-dense over the batch: (A8, D) x (TB, D)^T -> (A8, TB), f32 acc.
    y = lax.dot_general(w2_ref[...], h,
                        dimension_numbers=(((1,), (1,)), ((), ())),
                        preferred_element_type=jnp.float32)

    # Drop the sublane-padding rows (exact: padded w2 rows are zero anyway)
    # and add the bias; (A, TB) store is lane-dense over the batch.
    o_ref[...] = y[: o_ref.shape[0], :] + b2_ref[...]


def prepare_params(w1, b1, w2, b2):
    """One-time parameter glue (hoisted off the per-call path).

    Transposes PyTorch-convention fc1 weights to (in, out); keeps fc2 weights
    in (out, in) orientation but zero-pads the out dim up to a multiple of 8
    sublanes (padded rows are sliced off in-kernel before the store); casts
    matmul operands to bf16; keeps biases in f32.
    """
    D, S = w1.shape
    A = w2.shape[0]
    A8 = max(8, _round_up(A, 8))

    w1_t = jnp.asarray(w1, jnp.float32).T.astype(jnp.bfloat16)            # (S, D)
    b1_r = jnp.asarray(b1, jnp.float32).reshape(1, D)                     # (1, D)
    w2_p = (jnp.zeros((A8, D), jnp.float32)
            .at[:A].set(jnp.asarray(w2, jnp.float32))
            .astype(jnp.bfloat16))                                        # (A8, D)
    b2_r = jnp.asarray(b2, jnp.float32).reshape(A, 1)                     # (A, 1)
    return (w1_t, b1_r, w2_p, b2_r), A


@functools.partial(jax.jit, static_argnames=("num_out", "tile_b"))
def value_nn_forward(x, params, *, num_out, tile_b=8192):
    """Forward pass of Value_NN.  x: (B, num_states); params from
    prepare_params(); num_out: output feature count.  Returns (B, num_out)."""
    w1_t, b1_r, w2_p, b2_r = params
    B, S = x.shape
    D = w1_t.shape[1]
    A = num_out

    # Batch tile selection:
    #  * B < 128: a single full-array block (always a legal block shape),
    #  * otherwise: multiples of 128 rows (lane-dense output store), capped at
    #    tile_b and halved when possible so the grid has >= 2 blocks for v7x
    #    megacore sharding.  The ragged last block overhangs; Pallas clips the
    #    out-of-range writeback, so B never needs padding.
    if B < 128:
        tile = B
    else:
        half = _round_up(pl.cdiv(B, 2), 128)
        tile = max(128, min(tile_b, (B // 128) * 128, half))
    grid = pl.cdiv(B, tile)

    out = pl.pallas_call(
        _value_mlp_kernel,
        out_shape=jax.ShapeDtypeStruct((A, B), jnp.float32),
        grid=(grid,),
        in_specs=[
            pl.BlockSpec((tile, S), lambda i: (i, 0)),        # x: tiled over batch
            pl.BlockSpec((S, D), lambda i: (0, 0)),           # w1: VMEM-resident
            pl.BlockSpec((1, D), lambda i: (0, 0)),           # b1: VMEM-resident
            pl.BlockSpec(w2_p.shape, lambda i: (0, 0)),       # w2: VMEM-resident
            pl.BlockSpec(b2_r.shape, lambda i: (0, 0)),       # b2: VMEM-resident
        ],
        out_specs=pl.BlockSpec((A, tile), lambda i: (0, i)),  # lane-dense output
        compiler_params=pltpu.CompilerParams(
            dimension_semantics=("parallel",),                # megacore shard on v7x
            vmem_limit_bytes=32 << 20),
    )(x, w1_t, b1_r, w2_p, b2_r)

    # (num_out, B) -> (B, num_out).  For num_out == 1 (the value-net case) this
    # transpose is a pure reshape: no extra HBM pass.
    return out.T


if __name__ == "__main__":
    # Small shapes consistent with the module: num_states=16, dim=32, output=1
    B, num_states, dim, output = 8, 16, 32, 1

    key = jax.random.PRNGKey(0)
    kx, k1, k2, k3, k4, kx2 = jax.random.split(key, 6)

    x = jax.random.normal(kx, (B, num_states), dtype=jnp.float32)
    # Deterministic parameter init (PyTorch-Linear-style uniform bounds)
    bound1 = 1.0 / (num_states ** 0.5)
    w1 = jax.random.uniform(k1, (dim, num_states), minval=-bound1, maxval=bound1)
    b1 = jax.random.uniform(k2, (dim,), minval=-bound1, maxval=bound1)
    bound2 = 1.0 / (dim ** 0.5)
    w2 = jax.random.uniform(k3, (output, dim), minval=-bound2, maxval=bound2)
    b2 = jax.random.uniform(k4, (output,), minval=-bound2, maxval=bound2)

    params, num_out = prepare_params(w1, b1, w2, b2)

    out = value_nn_forward(x, params, num_out=num_out)
    jax.block_until_ready(out)
    assert out.shape == (B, output)

    # Tight reference: same bf16-rounded operands, f32 accumulation.
    def r(v):  # bf16 round-trip
        return v.astype(jnp.bfloat16).astype(jnp.float32)
    h_ref = jnp.maximum(r(x) @ r(w1).T + b1, 0.0)
    ref_tight = r(h_ref) @ r(w2).T + b2
    assert jnp.allclose(out, ref_tight, atol=1e-3, rtol=1e-3)

    # Loose semantic check against the plain f32 PyTorch-equivalent forward.
    ref_f32 = jnp.maximum(x @ w1.T + b1, 0.0) @ w2.T + b2
    assert jnp.allclose(out, ref_f32, atol=5e-2, rtol=5e-2)

    # Exercise the multi-block grid + ragged-last-tile (clipped writeback) path.
    B2 = 1050
    x2 = jax.random.normal(kx2, (B2, num_states), dtype=jnp.float32)
    out2 = value_nn_forward(x2, params, num_out=num_out)
    jax.block_until_ready(out2)
    assert out2.shape == (B2, output)
    ref2 = jnp.maximum(x2 @ w1.T + b1, 0.0) @ w2.T + b2
    assert jnp.allclose(out2, ref2, atol=5e-2, rtol=5e-2)

    print("KERNEL_OK")
</pallas_src>

<mosaic_0001>
module attributes {stable_mosaic.version = 11 : i64} {
  func.func @_value_mlp_kernel(%arg0: i32, %arg1: memref<8x16xf32, #tpu.memory_space<vmem>>, %arg2: memref<16x32xbf16, #tpu.memory_space<vmem>>, %arg3: memref<1x32xf32, #tpu.memory_space<vmem>>, %arg4: memref<8x32xbf16, #tpu.memory_space<vmem>>, %arg5: memref<1x1xf32, #tpu.memory_space<vmem>>, %arg6: memref<1x8xf32, #tpu.memory_space<vmem>>) attributes {dimension_semantics = [#tpu.dimension_semantics<parallel>], iteration_bounds = array<i64: 1>, scalar_prefetch = 0 : i64, scratch_operands = 0 : i64, tpu.core_type = #tpu.core_type<tc>, window_params = [{transform_indices = @transform_0, window_bounds = array<i64: 8, 16>}, {pipeline_mode = #tpu.pipeline_mode<synchronous>, transform_indices = @transform_1, window_bounds = array<i64: 16, 32>}, {pipeline_mode = #tpu.pipeline_mode<synchronous>, transform_indices = @transform_2, window_bounds = array<i64: 1, 32>}, {pipeline_mode = #tpu.pipeline_mode<synchronous>, transform_indices = @transform_3, window_bounds = array<i64: 8, 32>}, {pipeline_mode = #tpu.pipeline_mode<synchronous>, transform_indices = @transform_4, window_bounds = array<i64: 1, 1>}, {transform_indices = @transform_5, window_bounds = array<i64: 1, 8>}]} {
    %c0 = arith.constant 0 : index
    %c0_0 = arith.constant 0 : index
    %0 = vector.load %arg1[%c0, %c0_0] : memref<8x16xf32, #tpu.memory_space<vmem>>, vector<8x16xf32>
    %1 = arith.truncf %0 : vector<8x16xf32> to vector<8x16xbf16>
    %c0_1 = arith.constant 0 : index
    %c0_2 = arith.constant 0 : index
    %2 = vector.load %arg2[%c0_1, %c0_2] : memref<16x32xbf16, #tpu.memory_space<vmem>>, vector<16x32xbf16>
    %cst = arith.constant dense<0.000000e+00> : vector<8x32xf32>
    %3 = tpu.matmul %1, %2, %cst {dimension_numbers = #tpu.dot_dimension_numbers<[1], [0], [0], [1], [0, 0, 1, 1], [], []>} : vector<8x16xbf16>, vector<16x32xbf16>, vector<8x32xf32> -> vector<8x32xf32>
    %c0_3 = arith.constant 0 : index
    %c0_4 = arith.constant 0 : index
    %4 = vector.load %arg3[%c0_3, %c0_4] : memref<1x32xf32, #tpu.memory_space<vmem>>, vector<1x32xf32>
    %5 = vector.broadcast %4 : vector<1x32xf32> to vector<8x32xf32>
    %6 = arith.addf %3, %5 : vector<8x32xf32>
    %cst_5 = arith.constant 0.000000e+00 : f32
    %7 = vector.broadcast %cst_5 : f32 to vector<8x32xf32>
    %8 = arith.maximumf %6, %7 : vector<8x32xf32>
    %9 = arith.truncf %8 : vector<8x32xf32> to vector<8x32xbf16>
    %c0_6 = arith.constant 0 : index
    %c0_7 = arith.constant 0 : index
    %10 = vector.load %arg4[%c0_6, %c0_7] : memref<8x32xbf16, #tpu.memory_space<vmem>>, vector<8x32xbf16>
    %cst_8 = arith.constant dense<0.000000e+00> : vector<8x8xf32>
    %11 = tpu.matmul %10, %9, %cst_8 {dimension_numbers = #tpu.dot_dimension_numbers<[1], [1], [0], [0], [0, 0, 1, 0], [], []>} : vector<8x32xbf16>, vector<8x32xbf16>, vector<8x8xf32> -> vector<8x8xf32>
    %12 = vector.extract_strided_slice %11 {offsets = [0, 0], sizes = [1, 8], strides = [1, 1]} : vector<8x8xf32> to vector<1x8xf32>
    %c0_9 = arith.constant 0 : index
    %c0_10 = arith.constant 0 : index
    %13 = vector.load %arg5[%c0_9, %c0_10] : memref<1x1xf32, #tpu.memory_space<vmem>>, vector<1x1xf32>
    %14 = vector.broadcast %13 : vector<1x1xf32> to vector<1x8xf32>
    %15 = arith.addf %12, %14 : vector<1x8xf32>
    %c0_11 = arith.constant 0 : index
    %c0_12 = arith.constant 0 : index
    %16 = vector.load %arg6[%c0_11, %c0_12] : memref<1x8xf32, #tpu.memory_space<vmem>>, vector<1x8xf32>
    tpu.vector_store %arg6[%c0_11, %c0_12], %15 {strides = array<i32>} : memref<1x8xf32, #tpu.memory_space<vmem>>, vector<1x8xf32>,
    return
  }
  func.func @transform_0(%arg0: i32) -> (i32, i32) {
    %c0_i32 = arith.constant 0 : i32
    %c0_i32_0 = arith.constant 0 : i32
    return %arg0, %c0_i32 : i32, i32
  }
  func.func @transform_1(%arg0: i32) -> (i32, i32) {
    %c0_i32 = arith.constant 0 : i32
    %c0_i32_0 = arith.constant 0 : i32
    %c0_i32_1 = arith.constant 0 : i32
    return %c0_i32, %c0_i32_0 : i32, i32
  }
  func.func @transform_2(%arg0: i32) -> (i32, i32) {
    %c0_i32 = arith.constant 0 : i32
    %c0_i32_0 = arith.constant 0 : i32
    %c0_i32_1 = arith.constant 0 : i32
    return %c0_i32, %c0_i32_0 : i32, i32
  }
  func.func @transform_3(%arg0: i32) -> (i32, i32) {
    %c0_i32 = arith.constant 0 : i32
    %c0_i32_0 = arith.constant 0 : i32
    %c0_i32_1 = arith.constant 0 : i32
    return %c0_i32, %c0_i32_0 : i32, i32
  }
  func.func @transform_4(%arg0: i32) -> (i32, i32) {
    %c0_i32 = arith.constant 0 : i32
    %c0_i32_0 = arith.constant 0 : i32
    %c0_i32_1 = arith.constant 0 : i32
    return %c0_i32, %c0_i32_0 : i32, i32
  }
  func.func @transform_5(%arg0: i32) -> (i32, i32) {
    %c0_i32 = arith.constant 0 : i32
    %c0_i32_0 = arith.constant 0 : i32
    return %c0_i32, %arg0 : i32, i32
  }
}

</mosaic_0001>

<bundles_post_ra>
// kernel: value_nn_forward.1
= control target key start
LH: loop header
LB: loop body
LE: loop exit
PB: predicated region body
PF: predicated region fallthrough
CT: control target
= control target key end

     0   :  { %s322_s0 = inlined_call_operand.hbm [shape: f32[8,16], index: 0, kind: input, shape index: {}]   ;;  %s323_s1 = inlined_call_operand.hbm [shape: bf16[16,32], index: 1, kind: input, shape index: {}]   ;;  %s324_s2 = inlined_call_operand.hbm [shape: f32[1,32], index: 2, kind: input, shape index: {}]   ;;  %s325_s3 = inlined_call_operand.vmem [shape: bf16[8,32], index: 3, kind: input, shape index: {}]   ;;  %s326_s4 = inlined_call_operand.<no memory space> [shape: f32[1,1], index: 4, kind: input, shape index: {}]   ;;  %s327_s5 = inlined_call_operand.hbm [shape: f32[1,8], index: 5, kind: output, shape index: {}]  }
   0x1   :  { %v10_v0 = vstv %s326_s4 }
   0x2   :  { %11 = vst [vmem:[#allocation2] sm:$0x1] %v10_v0 }
   0x3   :  { %12 = vsyncpa [#allocation4], 0 }
   0x4   :  { %13 = vsyncpa [#allocation7], 0  ;;  %s30_s22 = sshll.u32 %s323_s1, 4  ;;  %s31_s22 = int_to_ptr.hbm [resolvable:$true] %s30_s22 }
   0x5   :  { %14 = vsyncpa [#allocation5], 0  ;;  %s267_s23 = smov [#allocation6]   ;;  %s20_s27 = sshll.u32 %s322_s0, 4  ;;  %s21_s27 = int_to_ptr.hbm [resolvable:$true] %s20_s27 }
   0x6   :  { %s32_s24 = sshll.u32 %s267_s23, 4  ;;  %s268_s28 = smov 64   ;;  %s33_s24 = int_to_ptr.vmem [resolvable:$true] %s32_s24 }
   0x7   :  { %s269_s29 = smov 4   ;;  %s270_s4 = smov [#allocation3]  }
   0x8   :  { %38 = dma.hbm_to_vmem [thread:$0]  %s31_s22, 128, %s33_s24, [#allocation7], %s268_s28, %s268_s28, %s269_s29  }
   0x9   :  { %s22_s30 = sshll.u32 %s270_s4, 4  ;;  %s44_s8 = sshll.u32 %s324_s2, 4  ;;  %s23_s30 = int_to_ptr.vmem [resolvable:$true] %s22_s30  ;;  %s45_s8 = int_to_ptr.hbm [resolvable:$true] %s44_s8 }
   0xa   :  { %25 = dma.hbm_to_vmem [thread:$0]  %s21_s27, 128, %s23_s30, [#allocation4]  }
   0xb   :  { %s271_s1 = smov [#allocation8]  }
   0xc   :  { %s46_s9 = sshll.u32 %s271_s1, 4  ;;  %s47_s9 = int_to_ptr.vmem [resolvable:$true] %s46_s9 }
   0xd   :  { %49 = dma.hbm_to_vmem [thread:$0]  %s45_s8, 16, %s47_s9, [#allocation7]  }
   0xe   :  { %261 = dma.done.wait [#allocation4], 128  }
   0xf   :  { %262 = vsyncadd [#allocation4], 4294967168 }
  0x10   :  { %263 = dma.done.wait [#allocation7], 144  }
  0x11   :  { %264 = vsyncadd [#allocation7], 4294967152  ;;  %v155_v1 = vld [vmem:[#allocation6] sm:$0xff]  ;;  %v67_v2 = vld [vmem:[#allocation3] sm:$0xff]  ;;  %vm81_vm0 = vcmask 130048   ;;  %v272_v5 = vmov 0  }
  0x12   :  { %v68_v3 = vpack.c.bf16 %v67_v2, %v67_v2  ;;  %92 = vmatpush.bf16.msra.mxu0 %v155_v1  ;;  %v121_v4 = vld [vmem:[#allocation2] sm:$0x1]  ;;  %163 = vset.pattern.permute.xlu0 %v272_v5  ;;  %v164_v6 = vld [vmem:[#allocation8] ss:$0 sm:$0xff]  ;;  %vm101_vm1 = vcmask 261120   ;;  %s273_s10 = smov [#allocation9]  }
  0x13   :  { %124 = vperm.xlu0 %163, %v121_v4   ;;  %v100_v13 = vld [vmem:[%s325_s3] sm:$0xf]  ;;  %s136_s11 = sshll.u32 %s273_s10, 4  ;;  %s138_s14 = sshll.u32 %s327_s5, 4  ;;  %vm129_vm2 = vcmask 57344   ;;  %s137_s11 = int_to_ptr.vmem [resolvable:$true] %s136_s11  ;;  %s139_s14 = int_to_ptr.hbm [resolvable:$true] %s138_s14 }
  0x15   :  { %153 = vmatmul.msk.bf16.vlgmr.msra.gmra.mxu0 %vm81_vm0, %v68_v3 }
  0x85   :  { %v125_v14 = vpop.permute.xlu0 %124 }
  0x86   :  { %v127_v15 = vperm.slane %v125_v14, 0 }
  0x92   :  { %v94_v7 = vpop.f32.mrf.mxu0 }
  0x93   :  { %v95_v8 = vadd.f32 %v164_v6, %v94_v7 }
  0x95   :  { %v98_v9 = vmax.f32 %v95_v8, 0.0 }
  0x97   :  { %v99_v10 = vpack.c.bf16 %v98_v9, %v98_v9 }
  0x99   :  { %v106_v11 = vsel %vm101_vm1, %v99_v10, 0 }
  0x9a   :  { %v96_v12 = vpop.f32.mrf.mxu0  ;;  %115 = vmatpush.bf16.xpose.msra.mxu1 %v106_v11 }
  0xa1   :  { %154 = vmatmul.msk.bf16.vlgmr.msra.gmra.mxu1 %vm101_vm1, %v100_v13 }
 0x11e   :  { %v117_v16 = vpop.f32.mrf.mxu1 }
 0x11f   :  { %v128_v17 = vadd.f32 %v127_v15, %v117_v16 }
 0x121   :  { %130 = vst.msk [vmem:[#allocation9] sm:$0x1] %vm129_vm2, %v128_v17 }
 0x122   :  { %141 = dma.vmem_to_hbm [thread:$0]  %s137_s11, 16, %s139_s14, [#allocation5]  }
 0x126   :  { %v119_v18 = vpop.f32.mrf.mxu1 }
 0x127   :  { %265 = dma.done.wait [#allocation5], 16  }
 0x128   :  { %266 = vsyncadd [#allocation5], 4294967280 }
 0x129   :  { %146 = vsyncpa [#allocation4], 1 }
 0x12a   :  { %147 = vsyncpa [#allocation7], 1 }
 0x12b   :  { %148 = vsyncpa [#allocation5], 1 }

</bundles_post_ra>
